<compile_context>
chip_gen: v7x
topology: tpu7x:2x2x1
jax: 0.10.0
libtpu: 0.0.40
codegen_flags: <defaults>
</compile_context>

<pallas_src>
import jax
import jax.numpy as jnp
from jax.experimental import pallas as pl
from jax.experimental.pallas import tpu as pltpu


def receiver_kernel(m_ref, emb_w_ref, w_gate_ref, w_hh_ref, b_ref,
                    aff_w_ref, aff_b_ref, out_ref, emb_ref):
    # m_ref      : [B, T, V]   message (one-hot / relaxed, float32)
    # emb_w_ref  : [V, E]      embedding table
    # w_gate_ref : [V, 4H]     embedding @ w_ih.T, i/f/o columns pre-scaled 0.5
    # w_hh_ref   : [H, 4H]     LSTM recurrent weights (transposed, i/f/o * 0.5)
    # b_ref      : [1, 4H]     b_ih + b_hh (i/f/o entries * 0.5)
    # aff_w_ref  : [H, F]      output projection (pre-transposed)
    # aff_b_ref  : [1, F]
    # out_ref    : [B, F]
    # emb_ref    : [B*T, E]    flat embedding slab (row index = b*T + t)
    B, T, _ = m_ref.shape
    H = w_hh_ref.shape[0]

    # ---------- hoisted, time-parallel work (batched over all B*T rows) ------
    m_flat = m_ref[...].reshape(B * T, -1)                       # free leading-dim merge

    # Two independent MXU calls, both depending only on m_flat: the gate
    # matmul no longer waits on emb, so the first recurrence step can start
    # while the emb store/writeback proceeds in parallel.
    emb_ref[...] = jnp.dot(m_flat, emb_w_ref[...],
                           preferred_element_type=jnp.float32)            # [B*T, E]
    gates_in = (jnp.dot(m_flat, w_gate_ref[...],
                        preferred_element_type=jnp.float32)
                + b_ref[...])                                             # [B*T, 4H]

    # One time-major relayout up front; the per-step slices inside the
    # recurrence are then static whole-tile indices (no cross-sublane gathers
    # and no T extra live vregs on the serial path).
    gates_tm = jnp.transpose(gates_in.reshape(B, T, 4 * H), (1, 0, 2))    # [T, B, 4H]

    w_hh = w_hh_ref[...]
    h = jnp.zeros((B, H), jnp.float32)
    c = jnp.zeros((B, H), jnp.float32)

    # ---------- serial recurrence, fully unrolled (T is small & static) ------
    # Per step: one [B,H]x[H,4H] MXU call + two full-vreg EUP passes
    # (tanh(gates), tanh(c)).  The i/f/o sigmoids are recovered from the same
    # tanh pass via sigmoid(x) = 0.5*tanh(x/2) + 0.5 (weights pre-halved), the
    # 0.5*th + 0.5 fixup rides in spare VPU slots.  Gate order: i, f, g, o.
    # TODO(synk): on v7x, stage w_hh once via pltpu.matmul_push_rhs and drive
    # the T steps with matmul_acc_lhs/matmul_pop to avoid re-pushing the RHS
    # each serial step; kept portable (jnp.dot) across v5e/v6e/v7x here.
    for t in range(T):
        gates = gates_tm[t] + jnp.dot(h, w_hh,
                                      preferred_element_type=jnp.float32)  # [B,4H]
        th = jnp.tanh(gates)           # single EUP pass over the [8,128] tile
        sg = 0.5 * th + 0.5            # VPU: sigmoid of original i/f/o gates
        i_g = sg[:, 0 * H:1 * H]
        f_g = sg[:, 1 * H:2 * H]
        g_g = th[:, 2 * H:3 * H]
        o_g = sg[:, 3 * H:4 * H]
        c = f_g * c + i_g * g_g
        h = o_g * jnp.tanh(c)

    out_ref[...] = (jnp.dot(h, aff_w_ref[...], preferred_element_type=jnp.float32)
                    + aff_b_ref[...])


def receiver_forward(m, params):
    """m: [B, T, V] float32. Returns (out [1, B, F], emb [B, T, E])."""
    B, T, V = m.shape
    E = params["embedding"].shape[1]
    H = params["w_hh"].shape[1]
    F = params["aff_w"].shape[0]

    # Gate-column scale: halve i/f/o so sigmoid(x) == 0.5*tanh(x_scaled) + 0.5
    # (exact power-of-2 scaling; g columns untouched).
    scale = jnp.concatenate([jnp.full((H,), 0.5, jnp.float32),
                             jnp.full((H,), 0.5, jnp.float32),
                             jnp.ones((H,), jnp.float32),
                             jnp.full((H,), 0.5, jnp.float32)])[None, :]   # [1, 4H]

    # Fold the embedding into the input-side gate weights: gates = m @ W_gate + b.
    w_gate = (params["embedding"] @ params["w_ih"].T) * scale              # [V, 4H]
    w_hh_t = params["w_hh"].T * scale                                      # [H, 4H]
    b = (params["b_ih"] + params["b_hh"])[None, :] * scale                 # [1, 4H]
    aff_w_t = params["aff_w"].T                                            # [H, F]
    aff_b = params["aff_b"][None, :]                                       # [1, F]

    # TODO(synk): if the caller holds pre-softmax logits, fuse the softmax into
    # this kernel to remove the HBM round trip that dominates at tiny B, T.
    # TODO(synk): only add a "parallel" batch grid axis (v7x two-TC split) once
    # B >= 16 in multiples of 8; at B=8 grid=(1,) is strictly cheaper.
    out, emb_flat = pl.pallas_call(
        receiver_kernel,
        grid=(1,),
        in_specs=[
            pl.BlockSpec((B, T, V), lambda i: (0, 0, 0)),
            pl.BlockSpec((V, E), lambda i: (0, 0)),
            pl.BlockSpec((V, 4 * H), lambda i: (0, 0)),
            pl.BlockSpec((H, 4 * H), lambda i: (0, 0)),
            pl.BlockSpec((1, 4 * H), lambda i: (0, 0)),
            pl.BlockSpec((H, F), lambda i: (0, 0)),
            pl.BlockSpec((1, F), lambda i: (0, 0)),
        ],
        out_specs=[
            pl.BlockSpec((B, F), lambda i: (0, 0)),
            pl.BlockSpec((B * T, E), lambda i: (0, 0)),
        ],
        out_shape=(
            jax.ShapeDtypeStruct((B, F), jnp.float32),
            jax.ShapeDtypeStruct((B * T, E), jnp.float32),
        ),
        compiler_params=pltpu.CompilerParams(
            dimension_semantics=("arbitrary",)),
    )(m, params["embedding"], w_gate, w_hh_t, b, aff_w_t, aff_b)

    emb = emb_flat.reshape(B, T, E)                          # free row-major reshape
    return out[None, ...], emb                               # LSTM h is [1, B, H]


def init_params(key, n_image_features, vocab_size, embedding_dim, hidden_size):
    """Deterministic parameter init mimicking Receiver.reset_parameters shapes."""
    k1, k2, k3, k4 = jax.random.split(key, 4)
    H = hidden_size
    embedding = 0.1 * jax.random.normal(k1, (vocab_size, embedding_dim), jnp.float32)
    aff_w = 0.1 * jax.random.normal(k2, (n_image_features, hidden_size), jnp.float32)
    aff_b = jnp.zeros((n_image_features,), jnp.float32)
    # xavier-ish for w_ih, plain normal stand-in for orthogonal w_hh
    bound = (6.0 / (4 * H + embedding_dim)) ** 0.5
    w_ih = jax.random.uniform(k3, (4 * H, embedding_dim), jnp.float32, -bound, bound)
    w_hh = 0.1 * jax.random.normal(k4, (4 * H, H), jnp.float32)
    b_ih = jnp.zeros((4 * H,), jnp.float32)
    b_hh = jnp.zeros((4 * H,), jnp.float32).at[H:2 * H].set(1.0)  # forget-gate bias = 1
    return dict(embedding=embedding, w_ih=w_ih, w_hh=w_hh, b_ih=b_ih, b_hh=b_hh,
                aff_w=aff_w, aff_b=aff_b)


def receiver_reference(m, params):
    """Pure-JAX reference for correctness check (standard sigmoid/tanh LSTM)."""
    B, T, V = m.shape
    H = params["w_hh"].shape[1]
    emb = jnp.einsum("btv,ve->bte", m, params["embedding"])
    h = jnp.zeros((B, H), jnp.float32)
    c = jnp.zeros((B, H), jnp.float32)
    for t in range(T):
        x = emb[:, t, :]
        gates = (x @ params["w_ih"].T + params["b_ih"]
                 + h @ params["w_hh"].T + params["b_hh"])
        i = jax.nn.sigmoid(gates[:, 0 * H:1 * H])
        f = jax.nn.sigmoid(gates[:, 1 * H:2 * H])
        g = jnp.tanh(gates[:, 2 * H:3 * H])
        o = jax.nn.sigmoid(gates[:, 3 * H:4 * H])
        c = f * c + i * g
        h = o * jnp.tanh(c)
    out = h @ params["aff_w"].T + params["aff_b"]
    return out[None, ...], emb


if __name__ == "__main__":
    # small shapes: batch=8, seq=8, vocab=32, embedding_dim=32, hidden=32, n_image_features=16
    B, T, V, E, H, F = 8, 8, 32, 32, 32, 16
    key = jax.random.PRNGKey(0)
    k_param, k_msg = jax.random.split(key)
    params = init_params(k_param, n_image_features=F, vocab_size=V,
                         embedding_dim=E, hidden_size=H)
    # training-mode message: a relaxed one-hot distribution over vocab per timestep
    logits = jax.random.normal(k_msg, (B, T, V), jnp.float32)
    m = jax.nn.softmax(logits, axis=-1)

    out, emb = receiver_forward(m, params)
    out = jax.block_until_ready(out)
    emb = jax.block_until_ready(emb)

    out_ref, emb_ref = receiver_reference(m, params)
    assert out.shape == (1, B, F) and emb.shape == (B, T, E)
    assert jnp.allclose(out, out_ref, atol=1e-4, rtol=1e-4)
    assert jnp.allclose(emb, emb_ref, atol=1e-4, rtol=1e-4)
    print("KERNEL_OK")
</pallas_src>

<mosaic_0001>
module attributes {stable_mosaic.version = 11 : i64} {
  func.func @receiver_kernel(%arg0: i32, %arg1: memref<8x8x32xf32, #tpu.memory_space<vmem>>, %arg2: memref<32x32xf32, #tpu.memory_space<vmem>>, %arg3: memref<32x128xf32, #tpu.memory_space<vmem>>, %arg4: memref<32x128xf32, #tpu.memory_space<vmem>>, %arg5: memref<1x128xf32, #tpu.memory_space<vmem>>, %arg6: memref<32x16xf32, #tpu.memory_space<vmem>>, %arg7: memref<1x16xf32, #tpu.memory_space<vmem>>, %arg8: memref<8x16xf32, #tpu.memory_space<vmem>>, %arg9: memref<64x32xf32, #tpu.memory_space<vmem>>) attributes {dimension_semantics = [#tpu.dimension_semantics<arbitrary>], iteration_bounds = array<i64: 1>, scalar_prefetch = 0 : i64, scratch_operands = 0 : i64, tpu.core_type = #tpu.core_type<tc>, window_params = [{pipeline_mode = #tpu.pipeline_mode<synchronous>, transform_indices = @transform_0, window_bounds = array<i64: 8, 8, 32>}, {pipeline_mode = #tpu.pipeline_mode<synchronous>, transform_indices = @transform_1, window_bounds = array<i64: 32, 32>}, {pipeline_mode = #tpu.pipeline_mode<synchronous>, transform_indices = @transform_2, window_bounds = array<i64: 32, 128>}, {pipeline_mode = #tpu.pipeline_mode<synchronous>, transform_indices = @transform_3, window_bounds = array<i64: 32, 128>}, {pipeline_mode = #tpu.pipeline_mode<synchronous>, transform_indices = @transform_4, window_bounds = array<i64: 1, 128>}, {pipeline_mode = #tpu.pipeline_mode<synchronous>, transform_indices = @transform_5, window_bounds = array<i64: 32, 16>}, {pipeline_mode = #tpu.pipeline_mode<synchronous>, transform_indices = @transform_6, window_bounds = array<i64: 1, 16>}, {pipeline_mode = #tpu.pipeline_mode<synchronous>, transform_indices = @transform_7, window_bounds = array<i64: 8, 16>}, {pipeline_mode = #tpu.pipeline_mode<synchronous>, transform_indices = @transform_8, window_bounds = array<i64: 64, 32>}]} {
    %c0 = arith.constant 0 : index
    %c0_0 = arith.constant 0 : index
    %c0_1 = arith.constant 0 : index
    %0 = vector.load %arg1[%c0, %c0_0, %c0_1] : memref<8x8x32xf32, #tpu.memory_space<vmem>>, vector<8x8x32xf32>
    %1 = vector.shape_cast %0 : vector<8x8x32xf32> to vector<64x32xf32>
    %c0_2 = arith.constant 0 : index
    %c0_3 = arith.constant 0 : index
    %2 = vector.load %arg2[%c0_2, %c0_3] : memref<32x32xf32, #tpu.memory_space<vmem>>, vector<32x32xf32>
    %cst = arith.constant dense<0.000000e+00> : vector<64x32xf32>
    %3 = tpu.matmul %1, %2, %cst {dimension_numbers = #tpu.dot_dimension_numbers<[1], [0], [0], [1], [0, 0, 1, 1], [], []>} : vector<64x32xf32>, vector<32x32xf32>, vector<64x32xf32> -> vector<64x32xf32>
    %c0_4 = arith.constant 0 : index
    %c0_5 = arith.constant 0 : index
    %4 = vector.load %arg9[%c0_4, %c0_5] : memref<64x32xf32, #tpu.memory_space<vmem>>, vector<64x32xf32>
    tpu.vector_store %arg9[%c0_4, %c0_5], %3 {strides = array<i32>} : memref<64x32xf32, #tpu.memory_space<vmem>>, vector<64x32xf32>,
    %c0_6 = arith.constant 0 : index
    %c0_7 = arith.constant 0 : index
    %5 = vector.load %arg3[%c0_6, %c0_7] : memref<32x128xf32, #tpu.memory_space<vmem>>, vector<32x128xf32>
    %cst_8 = arith.constant dense<0.000000e+00> : vector<64x128xf32>
    %6 = tpu.matmul %1, %5, %cst_8 {dimension_numbers = #tpu.dot_dimension_numbers<[1], [0], [0], [1], [0, 0, 1, 1], [], []>} : vector<64x32xf32>, vector<32x128xf32>, vector<64x128xf32> -> vector<64x128xf32>
    %c0_9 = arith.constant 0 : index
    %c0_10 = arith.constant 0 : index
    %7 = vector.load %arg5[%c0_9, %c0_10] : memref<1x128xf32, #tpu.memory_space<vmem>>, vector<1x128xf32>
    %8 = vector.broadcast %7 : vector<1x128xf32> to vector<64x128xf32>
    %9 = arith.addf %6, %8 : vector<64x128xf32>
    %10 = vector.shape_cast %9 : vector<64x128xf32> to vector<8x8x128xf32>
    %11 = tpu.transpose %10, [1, 0, 2] : vector<8x8x128xf32> -> vector<8x8x128xf32>
    %c0_11 = arith.constant 0 : index
    %c0_12 = arith.constant 0 : index
    %12 = vector.load %arg4[%c0_11, %c0_12] : memref<32x128xf32, #tpu.memory_space<vmem>>, vector<32x128xf32>
    %cst_13 = arith.constant 0.000000e+00 : f32
    %13 = vector.broadcast %cst_13 : f32 to vector<8x32xf32>
    %cst_14 = arith.constant 0.000000e+00 : f32
    %14 = vector.broadcast %cst_14 : f32 to vector<8x32xf32>
    %15 = vector.extract_strided_slice %11 {offsets = [0, 0, 0], sizes = [1, 8, 128], strides = [1, 1, 1]} : vector<8x8x128xf32> to vector<1x8x128xf32>
    %16 = vector.shape_cast %15 : vector<1x8x128xf32> to vector<8x128xf32>
    %cst_15 = arith.constant dense<0.000000e+00> : vector<8x128xf32>
    %17 = tpu.matmul %13, %12, %cst_15 {dimension_numbers = #tpu.dot_dimension_numbers<[1], [0], [0], [1], [0, 0, 1, 1], [], []>} : vector<8x32xf32>, vector<32x128xf32>, vector<8x128xf32> -> vector<8x128xf32>
    %18 = arith.addf %16, %17 : vector<8x128xf32>
    %19 = math.tanh %18 : vector<8x128xf32>
    %cst_16 = arith.constant 5.000000e-01 : f32
    %20 = vector.broadcast %cst_16 : f32 to vector<8x128xf32>
    %21 = arith.mulf %20, %19 : vector<8x128xf32>
    %cst_17 = arith.constant 5.000000e-01 : f32
    %22 = vector.broadcast %cst_17 : f32 to vector<8x128xf32>
    %23 = arith.addf %21, %22 : vector<8x128xf32>
    %24 = vector.extract_strided_slice %23 {offsets = [0, 0], sizes = [8, 32], strides = [1, 1]} : vector<8x128xf32> to vector<8x32xf32>
    %25 = vector.extract_strided_slice %23 {offsets = [0, 32], sizes = [8, 32], strides = [1, 1]} : vector<8x128xf32> to vector<8x32xf32>
    %26 = vector.extract_strided_slice %19 {offsets = [0, 64], sizes = [8, 32], strides = [1, 1]} : vector<8x128xf32> to vector<8x32xf32>
    %27 = vector.extract_strided_slice %23 {offsets = [0, 96], sizes = [8, 32], strides = [1, 1]} : vector<8x128xf32> to vector<8x32xf32>
    %28 = arith.mulf %25, %14 : vector<8x32xf32>
    %29 = arith.mulf %24, %26 : vector<8x32xf32>
    %30 = arith.addf %28, %29 : vector<8x32xf32>
    %31 = math.tanh %30 : vector<8x32xf32>
    %32 = arith.mulf %27, %31 : vector<8x32xf32>
    %33 = vector.extract_strided_slice %11 {offsets = [1, 0, 0], sizes = [1, 8, 128], strides = [1, 1, 1]} : vector<8x8x128xf32> to vector<1x8x128xf32>
    %34 = vector.shape_cast %33 : vector<1x8x128xf32> to vector<8x128xf32>
    %cst_18 = arith.constant dense<0.000000e+00> : vector<8x128xf32>
    %35 = tpu.matmul %32, %12, %cst_18 {dimension_numbers = #tpu.dot_dimension_numbers<[1], [0], [0], [1], [0, 0, 1, 1], [], []>} : vector<8x32xf32>, vector<32x128xf32>, vector<8x128xf32> -> vector<8x128xf32>
    %36 = arith.addf %34, %35 : vector<8x128xf32>
    %37 = math.tanh %36 : vector<8x128xf32>
    %cst_19 = arith.constant 5.000000e-01 : f32
    %38 = vector.broadcast %cst_19 : f32 to vector<8x128xf32>
    %39 = arith.mulf %38, %37 : vector<8x128xf32>
    %cst_20 = arith.constant 5.000000e-01 : f32
    %40 = vector.broadcast %cst_20 : f32 to vector<8x128xf32>
    %41 = arith.addf %39, %40 : vector<8x128xf32>
    %42 = vector.extract_strided_slice %41 {offsets = [0, 0], sizes = [8, 32], strides = [1, 1]} : vector<8x128xf32> to vector<8x32xf32>
    %43 = vector.extract_strided_slice %41 {offsets = [0, 32], sizes = [8, 32], strides = [1, 1]} : vector<8x128xf32> to vector<8x32xf32>
    %44 = vector.extract_strided_slice %37 {offsets = [0, 64], sizes = [8, 32], strides = [1, 1]} : vector<8x128xf32> to vector<8x32xf32>
    %45 = vector.extract_strided_slice %41 {offsets = [0, 96], sizes = [8, 32], strides = [1, 1]} : vector<8x128xf32> to vector<8x32xf32>
    %46 = arith.mulf %43, %30 : vector<8x32xf32>
    %47 = arith.mulf %42, %44 : vector<8x32xf32>
    %48 = arith.addf %46, %47 : vector<8x32xf32>
    %49 = math.tanh %48 : vector<8x32xf32>
    %50 = arith.mulf %45, %49 : vector<8x32xf32>
    %51 = vector.extract_strided_slice %11 {offsets = [2, 0, 0], sizes = [1, 8, 128], strides = [1, 1, 1]} : vector<8x8x128xf32> to vector<1x8x128xf32>
    %52 = vector.shape_cast %51 : vector<1x8x128xf32> to vector<8x128xf32>
    %cst_21 = arith.constant dense<0.000000e+00> : vector<8x128xf32>
    %53 = tpu.matmul %50, %12, %cst_21 {dimension_numbers = #tpu.dot_dimension_numbers<[1], [0], [0], [1], [0, 0, 1, 1], [], []>} : vector<8x32xf32>, vector<32x128xf32>, vector<8x128xf32> -> vector<8x128xf32>
    %54 = arith.addf %52, %53 : vector<8x128xf32>
    %55 = math.tanh %54 : vector<8x128xf32>
    %cst_22 = arith.constant 5.000000e-01 : f32
    %56 = vector.broadcast %cst_22 : f32 to vector<8x128xf32>
    %57 = arith.mulf %56, %55 : vector<8x128xf32>
    %cst_23 = arith.constant 5.000000e-01 : f32
    %58 = vector.broadcast %cst_23 : f32 to vector<8x128xf32>
    %59 = arith.addf %57, %58 : vector<8x128xf32>
    %60 = vector.extract_strided_slice %59 {offsets = [0, 0], sizes = [8, 32], strides = [1, 1]} : vector<8x128xf32> to vector<8x32xf32>
    %61 = vector.extract_strided_slice %59 {offsets = [0, 32], sizes = [8, 32], strides = [1, 1]} : vector<8x128xf32> to vector<8x32xf32>
    %62 = vector.extract_strided_slice %55 {offsets = [0, 64], sizes = [8, 32], strides = [1, 1]} : vector<8x128xf32> to vector<8x32xf32>
    %63 = vector.extract_strided_slice %59 {offsets = [0, 96], sizes = [8, 32], strides = [1, 1]} : vector<8x128xf32> to vector<8x32xf32>
    %64 = arith.mulf %61, %48 : vector<8x32xf32>
    %65 = arith.mulf %60, %62 : vector<8x32xf32>
    %66 = arith.addf %64, %65 : vector<8x32xf32>
    %67 = math.tanh %66 : vector<8x32xf32>
    %68 = arith.mulf %63, %67 : vector<8x32xf32>
    %69 = vector.extract_strided_slice %11 {offsets = [3, 0, 0], sizes = [1, 8, 128], strides = [1, 1, 1]} : vector<8x8x128xf32> to vector<1x8x128xf32>
    %70 = vector.shape_cast %69 : vector<1x8x128xf32> to vector<8x128xf32>
    %cst_24 = arith.constant dense<0.000000e+00> : vector<8x128xf32>
    %71 = tpu.matmul %68, %12, %cst_24 {dimension_numbers = #tpu.dot_dimension_numbers<[1], [0], [0], [1], [0, 0, 1, 1], [], []>} : vector<8x32xf32>, vector<32x128xf32>, vector<8x128xf32> -> vector<8x128xf32>
    %72 = arith.addf %70, %71 : vector<8x128xf32>
    %73 = math.tanh %72 : vector<8x128xf32>
    %cst_25 = arith.constant 5.000000e-01 : f32
    %74 = vector.broadcast %cst_25 : f32 to vector<8x128xf32>
    %75 = arith.mulf %74, %73 : vector<8x128xf32>
    %cst_26 = arith.constant 5.000000e-01 : f32
    %76 = vector.broadcast %cst_26 : f32 to vector<8x128xf32>
    %77 = arith.addf %75, %76 : vector<8x128xf32>
    %78 = vector.extract_strided_slice %77 {offsets = [0, 0], sizes = [8, 32], strides = [1, 1]} : vector<8x128xf32> to vector<8x32xf32>
    %79 = vector.extract_strided_slice %77 {offsets = [0, 32], sizes = [8, 32], strides = [1, 1]} : vector<8x128xf32> to vector<8x32xf32>
    %80 = vector.extract_strided_slice %73 {offsets = [0, 64], sizes = [8, 32], strides = [1, 1]} : vector<8x128xf32> to vector<8x32xf32>
    %81 = vector.extract_strided_slice %77 {offsets = [0, 96], sizes = [8, 32], strides = [1, 1]} : vector<8x128xf32> to vector<8x32xf32>
    %82 = arith.mulf %79, %66 : vector<8x32xf32>
    %83 = arith.mulf %78, %80 : vector<8x32xf32>
    %84 = arith.addf %82, %83 : vector<8x32xf32>
    %85 = math.tanh %84 : vector<8x32xf32>
    %86 = arith.mulf %81, %85 : vector<8x32xf32>
    %87 = vector.extract_strided_slice %11 {offsets = [4, 0, 0], sizes = [1, 8, 128], strides = [1, 1, 1]} : vector<8x8x128xf32> to vector<1x8x128xf32>
    %88 = vector.shape_cast %87 : vector<1x8x128xf32> to vector<8x128xf32>
    %cst_27 = arith.constant dense<0.000000e+00> : vector<8x128xf32>
    %89 = tpu.matmul %86, %12, %cst_27 {dimension_numbers = #tpu.dot_dimension_numbers<[1], [0], [0], [1], [0, 0, 1, 1], [], []>} : vector<8x32xf32>, vector<32x128xf32>, vector<8x128xf32> -> vector<8x128xf32>
    %90 = arith.addf %88, %89 : vector<8x128xf32>
    %91 = math.tanh %90 : vector<8x128xf32>
    %cst_28 = arith.constant 5.000000e-01 : f32
    %92 = vector.broadcast %cst_28 : f32 to vector<8x128xf32>
    %93 = arith.mulf %92, %91 : vector<8x128xf32>
    %cst_29 = arith.constant 5.000000e-01 : f32
    %94 = vector.broadcast %cst_29 : f32 to vector<8x128xf32>
    %95 = arith.addf %93, %94 : vector<8x128xf32>
    %96 = vector.extract_strided_slice %95 {offsets = [0, 0], sizes = [8, 32], strides = [1, 1]} : vector<8x128xf32> to vector<8x32xf32>
    %97 = vector.extract_strided_slice %95 {offsets = [0, 32], sizes = [8, 32], strides = [1, 1]} : vector<8x128xf32> to vector<8x32xf32>
    %98 = vector.extract_strided_slice %91 {offsets = [0, 64], sizes = [8, 32], strides = [1, 1]} : vector<8x128xf32> to vector<8x32xf32>
    %99 = vector.extract_strided_slice %95 {offsets = [0, 96], sizes = [8, 32], strides = [1, 1]} : vector<8x128xf32> to vector<8x32xf32>
    %100 = arith.mulf %97, %84 : vector<8x32xf32>
    %101 = arith.mulf %96, %98 : vector<8x32xf32>
    %102 = arith.addf %100, %101 : vector<8x32xf32>
    %103 = math.tanh %102 : vector<8x32xf32>
    %104 = arith.mulf %99, %103 : vector<8x32xf32>
    %105 = vector.extract_strided_slice %11 {offsets = [5, 0, 0], sizes = [1, 8, 128], strides = [1, 1, 1]} : vector<8x8x128xf32> to vector<1x8x128xf32>
    %106 = vector.shape_cast %105 : vector<1x8x128xf32> to vector<8x128xf32>
    %cst_30 = arith.constant dense<0.000000e+00> : vector<8x128xf32>
    %107 = tpu.matmul %104, %12, %cst_30 {dimension_numbers = #tpu.dot_dimension_numbers<[1], [0], [0], [1], [0, 0, 1, 1], [], []>} : vector<8x32xf32>, vector<32x128xf32>, vector<8x128xf32> -> vector<8x128xf32>
    %108 = arith.addf %106, %107 : vector<8x128xf32>
    %109 = math.tanh %108 : vector<8x128xf32>
    %cst_31 = arith.constant 5.000000e-01 : f32
    %110 = vector.broadcast %cst_31 : f32 to vector<8x128xf32>
    %111 = arith.mulf %110, %109 : vector<8x128xf32>
    %cst_32 = arith.constant 5.000000e-01 : f32
    %112 = vector.broadcast %cst_32 : f32 to vector<8x128xf32>
    %113 = arith.addf %111, %112 : vector<8x128xf32>
    %114 = vector.extract_strided_slice %113 {offsets = [0, 0], sizes = [8, 32], strides = [1, 1]} : vector<8x128xf32> to vector<8x32xf32>
    %115 = vector.extract_strided_slice %113 {offsets = [0, 32], sizes = [8, 32], strides = [1, 1]} : vector<8x128xf32> to vector<8x32xf32>
    %116 = vector.extract_strided_slice %109 {offsets = [0, 64], sizes = [8, 32], strides = [1, 1]} : vector<8x128xf32> to vector<8x32xf32>
    %117 = vector.extract_strided_slice %113 {offsets = [0, 96], sizes = [8, 32], strides = [1, 1]} : vector<8x128xf32> to vector<8x32xf32>
    %118 = arith.mulf %115, %102 : vector<8x32xf32>
    %119 = arith.mulf %114, %116 : vector<8x32xf32>
    %120 = arith.addf %118, %119 : vector<8x32xf32>
    %121 = math.tanh %120 : vector<8x32xf32>
    %122 = arith.mulf %117, %121 : vector<8x32xf32>
    %123 = vector.extract_strided_slice %11 {offsets = [6, 0, 0], sizes = [1, 8, 128], strides = [1, 1, 1]} : vector<8x8x128xf32> to vector<1x8x128xf32>
    %124 = vector.shape_cast %123 : vector<1x8x128xf32> to vector<8x128xf32>
    %cst_33 = arith.constant dense<0.000000e+00> : vector<8x128xf32>
    %125 = tpu.matmul %122, %12, %cst_33 {dimension_numbers = #tpu.dot_dimension_numbers<[1], [0], [0], [1], [0, 0, 1, 1], [], []>} : vector<8x32xf32>, vector<32x128xf32>, vector<8x128xf32> -> vector<8x128xf32>
    %126 = arith.addf %124, %125 : vector<8x128xf32>
    %127 = math.tanh %126 : vector<8x128xf32>
    %cst_34 = arith.constant 5.000000e-01 : f32
    %128 = vector.broadcast %cst_34 : f32 to vector<8x128xf32>
    %129 = arith.mulf %128, %127 : vector<8x128xf32>
    %cst_35 = arith.constant 5.000000e-01 : f32
    %130 = vector.broadcast %cst_35 : f32 to vector<8x128xf32>
    %131 = arith.addf %129, %130 : vector<8x128xf32>
    %132 = vector.extract_strided_slice %131 {offsets = [0, 0], sizes = [8, 32], strides = [1, 1]} : vector<8x128xf32> to vector<8x32xf32>
    %133 = vector.extract_strided_slice %131 {offsets = [0, 32], sizes = [8, 32], strides = [1, 1]} : vector<8x128xf32> to vector<8x32xf32>
    %134 = vector.extract_strided_slice %127 {offsets = [0, 64], sizes = [8, 32], strides = [1, 1]} : vector<8x128xf32> to vector<8x32xf32>
    %135 = vector.extract_strided_slice %131 {offsets = [0, 96], sizes = [8, 32], strides = [1, 1]} : vector<8x128xf32> to vector<8x32xf32>
    %136 = arith.mulf %133, %120 : vector<8x32xf32>
    %137 = arith.mulf %132, %134 : vector<8x32xf32>
    %138 = arith.addf %136, %137 : vector<8x32xf32>
    %139 = math.tanh %138 : vector<8x32xf32>
    %140 = arith.mulf %135, %139 : vector<8x32xf32>
    %141 = vector.extract_strided_slice %11 {offsets = [7, 0, 0], sizes = [1, 8, 128], strides = [1, 1, 1]} : vector<8x8x128xf32> to vector<1x8x128xf32>
    %142 = vector.shape_cast %141 : vector<1x8x128xf32> to vector<8x128xf32>
    %cst_36 = arith.constant dense<0.000000e+00> : vector<8x128xf32>
    %143 = tpu.matmul %140, %12, %cst_36 {dimension_numbers = #tpu.dot_dimension_numbers<[1], [0], [0], [1], [0, 0, 1, 1], [], []>} : vector<8x32xf32>, vector<32x128xf32>, vector<8x128xf32> -> vector<8x128xf32>
    %144 = arith.addf %142, %143 : vector<8x128xf32>
    %145 = math.tanh %144 : vector<8x128xf32>
    %cst_37 = arith.constant 5.000000e-01 : f32
    %146 = vector.broadcast %cst_37 : f32 to vector<8x128xf32>
    %147 = arith.mulf %146, %145 : vector<8x128xf32>
    %cst_38 = arith.constant 5.000000e-01 : f32
    %148 = vector.broadcast %cst_38 : f32 to vector<8x128xf32>
    %149 = arith.addf %147, %148 : vector<8x128xf32>
    %150 = vector.extract_strided_slice %149 {offsets = [0, 0], sizes = [8, 32], strides = [1, 1]} : vector<8x128xf32> to vector<8x32xf32>
    %151 = vector.extract_strided_slice %149 {offsets = [0, 32], sizes = [8, 32], strides = [1, 1]} : vector<8x128xf32> to vector<8x32xf32>
    %152 = vector.extract_strided_slice %145 {offsets = [0, 64], sizes = [8, 32], strides = [1, 1]} : vector<8x128xf32> to vector<8x32xf32>
    %153 = vector.extract_strided_slice %149 {offsets = [0, 96], sizes = [8, 32], strides = [1, 1]} : vector<8x128xf32> to vector<8x32xf32>
    %154 = arith.mulf %151, %138 : vector<8x32xf32>
    %155 = arith.mulf %150, %152 : vector<8x32xf32>
    %156 = arith.addf %154, %155 : vector<8x32xf32>
    %157 = math.tanh %156 : vector<8x32xf32>
    %158 = arith.mulf %153, %157 : vector<8x32xf32>
    %c0_39 = arith.constant 0 : index
    %c0_40 = arith.constant 0 : index
    %159 = vector.load %arg6[%c0_39, %c0_40] : memref<32x16xf32, #tpu.memory_space<vmem>>, vector<32x16xf32>
    %cst_41 = arith.constant dense<0.000000e+00> : vector<8x16xf32>
    %160 = tpu.matmul %158, %159, %cst_41 {dimension_numbers = #tpu.dot_dimension_numbers<[1], [0], [0], [1], [0, 0, 1, 1], [], []>} : vector<8x32xf32>, vector<32x16xf32>, vector<8x16xf32> -> vector<8x16xf32>
    %c0_42 = arith.constant 0 : index
    %c0_43 = arith.constant 0 : index
    %161 = vector.load %arg7[%c0_42, %c0_43] : memref<1x16xf32, #tpu.memory_space<vmem>>, vector<1x16xf32>
    %162 = vector.broadcast %161 : vector<1x16xf32> to vector<8x16xf32>
    %163 = arith.addf %160, %162 : vector<8x16xf32>
    %c0_44 = arith.constant 0 : index
    %c0_45 = arith.constant 0 : index
    %164 = vector.load %arg8[%c0_44, %c0_45] : memref<8x16xf32, #tpu.memory_space<vmem>>, vector<8x16xf32>
    tpu.vector_store %arg8[%c0_44, %c0_45], %163 {strides = array<i32>} : memref<8x16xf32, #tpu.memory_space<vmem>>, vector<8x16xf32>,
    return
  }
  func.func @transform_0(%arg0: i32) -> (i32, i32, i32) {
    %c0_i32 = arith.constant 0 : i32
    %c0_i32_0 = arith.constant 0 : i32
    %c0_i32_1 = arith.constant 0 : i32
    %c0_i32_2 = arith.constant 0 : i32
    return %c0_i32, %c0_i32_0, %c0_i32_1 : i32, i32, i32
  }
  func.func @transform_1(%arg0: i32) -> (i32, i32) {
    %c0_i32 = arith.constant 0 : i32
    %c0_i32_0 = arith.constant 0 : i32
    %c0_i32_1 = arith.constant 0 : i32
    return %c0_i32, %c0_i32_0 : i32, i32
  }
  func.func @transform_2(%arg0: i32) -> (i32, i32) {
    %c0_i32 = arith.constant 0 : i32
    %c0_i32_0 = arith.constant 0 : i32
    %c0_i32_1 = arith.constant 0 : i32
    return %c0_i32, %c0_i32_0 : i32, i32
  }
  func.func @transform_3(%arg0: i32) -> (i32, i32) {
    %c0_i32 = arith.constant 0 : i32
    %c0_i32_0 = arith.constant 0 : i32
    %c0_i32_1 = arith.constant 0 : i32
    return %c0_i32, %c0_i32_0 : i32, i32
  }
  func.func @transform_4(%arg0: i32) -> (i32, i32) {
    %c0_i32 = arith.constant 0 : i32
    %c0_i32_0 = arith.constant 0 : i32
    %c0_i32_1 = arith.constant 0 : i32
    return %c0_i32, %c0_i32_0 : i32, i32
  }
  func.func @transform_5(%arg0: i32) -> (i32, i32) {
    %c0_i32 = arith.constant 0 : i32
    %c0_i32_0 = arith.constant 0 : i32
    %c0_i32_1 = arith.constant 0 : i32
    return %c0_i32, %c0_i32_0 : i32, i32
  }
  func.func @transform_6(%arg0: i32) -> (i32, i32) {
    %c0_i32 = arith.constant 0 : i32
    %c0_i32_0 = arith.constant 0 : i32
    %c0_i32_1 = arith.constant 0 : i32
    return %c0_i32, %c0_i32_0 : i32, i32
  }
  func.func @transform_7(%arg0: i32) -> (i32, i32) {
    %c0_i32 = arith.constant 0 : i32
    %c0_i32_0 = arith.constant 0 : i32
    %c0_i32_1 = arith.constant 0 : i32
    return %c0_i32, %c0_i32_0 : i32, i32
  }
  func.func @transform_8(%arg0: i32) -> (i32, i32) {
    %c0_i32 = arith.constant 0 : i32
    %c0_i32_0 = arith.constant 0 : i32
    %c0_i32_1 = arith.constant 0 : i32
    return %c0_i32, %c0_i32_0 : i32, i32
  }
}

</mosaic_0001>

<bundles_post_ra>
// kernel: tpu_custom_call.1
= control target key start
LH: loop header
LB: loop body
LE: loop exit
PB: predicated region body
PF: predicated region fallthrough
CT: control target
= control target key end

     0   :  { %14 = vsyncpa [#allocation3], 0  ;;  %s2129_s0 = inlined_call_operand.hbm [shape: f32[8,8,32], index: 0, kind: input, shape index: {}]   ;;  %s2130_s1 = inlined_call_operand.vmem [shape: f32[32,32], index: 1, kind: input, shape index: {}]   ;;  %s2131_s2 = inlined_call_operand.hbm [shape: f32[32,128], index: 2, kind: input, shape index: {}]   ;;  %s2132_s3 = inlined_call_operand.hbm [shape: f32[32,128], index: 3, kind: input, shape index: {}]   ;;  %s2133_s4 = inlined_call_operand.vmem [shape: f32[1,128], index: 4, kind: input, shape index: {}]   ;;  %s2134_s5 = inlined_call_operand.vmem [shape: f32[32,16], index: 5, kind: input, shape index: {}]   ;;  %s2135_s6 = inlined_call_operand.vmem [shape: f32[1,16], index: 6, kind: input, shape index: {}]   ;;  %s2136_s7 = inlined_call_operand.hbm [shape: f32[8,16], index: 7, kind: output, shape index: {0}]   ;;  %s2137_s8 = inlined_call_operand.vmem [shape: f32[64,32], index: 8, kind: output, shape index: {1}]  }
   0x1   :  { %15 = vsyncpa [#allocation6], 0 }
   0x2   :  { %16 = vsyncpa [#allocation4], 0  ;;  %s1793_s27 = smov [#allocation5]   ;;  %s1794_s29 = smov [#allocation2]  }
   0x3   :  { %s36_s28 = sshll.u32 %s1793_s27, 4  ;;  %s22_s30 = sshll.u32 %s1794_s29, 4  ;;  %s37_s28 = int_to_ptr.vmem [resolvable:$true] %s36_s28  ;;  %s1851_s30 = int_to_ptr.vmem [resolvable:$true] %s22_s30 }
   0x4   :  { %s1699_s11 = scalar_lea.hbm %s2131_s2, 512 }
   0x5   :  { %p1700_p0 = scmp.ne.s32.totalorder %s2131_s2, %s1699_s11  ;;  %p1703_p1 = scmp.lt.u32.totalorder %s1699_s11, %s2131_s2 }
   0x7   :  { %p1705_p2 = pnand %p1703_p1, %p1700_p0 }
   0x9   :  { %1708 = shalt.err (!%p1705_p2)
}
   0xa   :  { %s1709_s16 = scalar_lea.vmem %s37_s28, 512  ;;  %p1714_p4 = scmp.lt.s32.totalorder %s37_s28, %s37_s28 }
   0xb   :  { %p1710_p3 = scmp.ne.s32.totalorder %s37_s28, %s1709_s16  ;;  %p1715_p5 = scmp.lt.s32.totalorder %s1709_s16, %s1709_s16 }
   0xd   :  { %p1716_p6 = por %p1715_p5, %p1714_p4 }
   0xf   :  { %p1717_p7 = pnand %p1716_p6, %p1710_p3 }
  0x11   :  { %1720 = shalt.err (!%p1717_p7)
}
  0x12   :  { %s1795_s17 = smov 128   ;;  %s1796_s18 = smov 8  }
  0x13   :  { %42 = dma.hbm_to_vmem [thread:$0]  %s2131_s2, 512, %s37_s28, [#allocation6], %s1795_s17, %s1795_s17, %s1796_s18  }
  0x14   :  { %s1721_s23 = scalar_lea.hbm %s2129_s0, 1024 }
  0x15   :  { %p1722_p8 = scmp.ne.s32.totalorder %s2129_s0, %s1721_s23  ;;  %p1725_p9 = scmp.lt.u32.totalorder %s1721_s23, %s2129_s0 }
  0x17   :  { %p1727_p10 = pnand %p1725_p9, %p1722_p8 }
  0x19   :  { %1730 = shalt.err (!%p1727_p10)
}
  0x1a   :  { %s1731_s29 = scalar_lea.vmem %s1851_s30, 1024  ;;  %p1736_p12 = scmp.lt.s32.totalorder %s1851_s30, %s1851_s30 }
  0x1b   :  { %p1732_p11 = scmp.ne.s32.totalorder %s1851_s30, %s1731_s29  ;;  %p1737_p13 = scmp.lt.s32.totalorder %s1731_s29, %s1731_s29 }
  0x1d   :  { %p1738_p0 = por %p1737_p13, %p1736_p12 }
  0x1f   :  { %p1739_p1 = pnand %p1738_p0, %p1732_p11 }
  0x21   :  { %1742 = shalt.err (!%p1739_p1)
}
  0x22   :  { %28 = dma.hbm_to_vmem [thread:$0]  %s2129_s0, 1024, %s1851_s30, [#allocation3], %s1795_s17, %s1795_s17, %s1796_s18  }
  0x23   :  { %s1797_s9 = smov [#allocation7]   ;;  %s1743_s13 = scalar_lea.hbm %s2132_s3, 512 }
  0x24   :  { %s48_s10 = sshll.u32 %s1797_s9, 4  ;;  %p1744_p2 = scmp.ne.s32.totalorder %s2132_s3, %s1743_s13  ;;  %s49_s10 = int_to_ptr.vmem [resolvable:$true] %s48_s10 }
  0x25   :  { %p1747_p3 = scmp.lt.u32.totalorder %s1743_s13, %s2132_s3 }
  0x27   :  { %p1749_p4 = pnand %p1747_p3, %p1744_p2 }
  0x29   :  { %1752 = shalt.err (!%p1749_p4)
}
  0x2a   :  { %s1753_s20 = scalar_lea.vmem %s49_s10, 512  ;;  %p1758_p6 = scmp.lt.s32.totalorder %s49_s10, %s49_s10 }
  0x2b   :  { %p1754_p5 = scmp.ne.s32.totalorder %s49_s10, %s1753_s20  ;;  %p1759_p7 = scmp.lt.s32.totalorder %s1753_s20, %s1753_s20 }
  0x2d   :  { %p1760_p8 = por %p1759_p7, %p1758_p6 }
  0x2f   :  { %p1761_p9 = pnand %p1760_p8, %p1754_p5 }
  0x31   :  { %1764 = shalt.err (!%p1761_p9)
}
  0x32   :  { %54 = dma.hbm_to_vmem [thread:$0]  %s2132_s3, 512, %s49_s10, [#allocation6], %s1795_s17, %s1795_s17, %s1796_s18  }
  0x33   :  { %1787 = dma.done.wait [#allocation3], 1024  }
  0x34   :  { %1788 = vsyncadd [#allocation3], 4294966272 }
  0x35   :  { %1789 = dma.done.wait [#allocation6], 1024  }
  0x36   :  { %1790 = vsyncadd [#allocation6], 4294966272  ;;  %vm82_vm0 = vcmask 261120   ;;  %v220_v0 = vld [vmem:[#allocation5] sm:$0xff]  ;;  %v221_v1 = vld [vmem:[#allocation5 + $0x8] sm:$0xff]  ;;  %v1798_v17 = vmov 0.0|0.0   ;;  %v341_v30 = vlaneseq }
  0x37   :  { %v222_v2 = vld [vmem:[#allocation5 + $0x10] sm:$0xff]  ;;  %v1592_v3 = vpack.c.bf16 %v221_v1, %v220_v0  ;;  %v223_v4 = vld [vmem:[#allocation5 + $0x18] sm:$0xff]  ;;  %v70_v5 = vld [vmem:[#allocation2] sm:$0xff]  ;;  %vm1799_vm1 = vmmov 0   ;;  %v1800_v27 = vmov 0.0   ;;  %s1804_s30 = smov 32  }
  0x38   :  { %v78_v6 = vld [vmem:[%s2130_s1] sm:$0xff]  ;;  %v1596_v7 = vpack.c.bf16 %v223_v4, %v222_v2  ;;  %1473 = vmatprep.mubr.msk.f32.mxu1 %vm82_vm0, %v70_v5  ;;  %v79_v8 = vld [vmem:[%s2130_s1 + $0x8] sm:$0xff]  ;;  %1453 = vmatprep.mubr.msk.f32.mxu0 %vm82_vm0, %v70_v5  ;;  %v80_v10 = vld [vmem:[%s2130_s1 + $0x10] sm:$0xff]  ;;  %v1801_v28 = vmov 1983009808   ;;  %v342_v34 = vshrl.u32 %v341_v30, 7 }
  0x39   :  { %1593 = vmatprep.subr.bf16.mxu1 %v1592_v3  ;;  %v1584_v9 = vpack.c.bf16 %v79_v8, %v78_v6  ;;  %v81_v11 = vld [vmem:[%s2130_s1 + $0x18] sm:$0xff]  ;;  %v472_v13 = vld [vmem:[#allocation7] sm:$0xff]  ;;  %v473_v14 = vld [vmem:[#allocation7 + $0x8] sm:$0xff]  ;;  %v339_v29 = vunpack.c.l.s4 %v1801_v28  ;;  %v1802_v37 = vmov 1934713408   ;;  %vm1328_vm2 = vcmask 130048  }
  0x3a   :  { %1595 = vmatpush3.bf16.msra.mxu1 %v1592_v3  ;;  %v1588_v12 = vpack.c.bf16 %v81_v11, %v80_v10  ;;  %v71_v15 = vld [vmem:[#allocation2 + $0x8] sm:$0xff]  ;;  %v72_v16 = vld [vmem:[#allocation2 + $0x10] sm:$0xff]  ;;  %v1918_v18 = vpack.c.bf16 %v473_v14, %v472_v13  ;;  %v475_v20 = vld [vmem:[#allocation7 + $0x18] sm:$0xff]  ;;  %v403_v38 = vunpack.c.l.s4 %v1802_v37 }
  0x3b   :  { %1597 = vmatprep.subr.bf16.mxu1 %v1596_v7  ;;  %1585 = vmatprep.subr.bf16.mxu0 %v1584_v9  ;;  %v474_v19 = vld [vmem:[#allocation7 + $0x10] sm:$0xff]  ;;  %v73_v21 = vld [vmem:[#allocation2 + $0x18] sm:$0xff]  ;;  %v74_v22 = vld [vmem:[#allocation2 + $0x20] sm:$0xff]  ;;  %v340_v33 = vunpack.c.0.s8 %v339_v29 }
  0x3c   :  { %1587 = vmatpush3.bf16.msra.mxu0 %v1584_v9  ;;  %v1928_v23 = vpack.c.bf16 %v475_v20, %v474_v19  ;;  %v75_v24 = vld [vmem:[#allocation2 + $0x28] sm:$0xff]  ;;  %v76_v25 = vld [vmem:[#allocation2 + $0x30] sm:$0xff]  ;;  %v77_v26 = vld [vmem:[#allocation2 + $0x38] sm:$0xff]  ;;  %v404_v48 = vunpack.c.0.s8 %v403_v38 }
  0x3d   :  { %1589 = vmatprep.subr.bf16.mxu0 %v1588_v12  ;;  %v1358_v35 = vld [vmem:[%s2133_s4] ss:$0 sm:$0xff]  ;;  %v343_v43 = vsub.s32 %v340_v33, %v342_v34 }
  0x3e   :  { %1599 = vmatpush3.bf16.msra.mxu1 %v1596_v7  ;;  %v407_v61 = vsub.s32 %v404_v48, %v342_v34 }
  0x3f   :  { %1606 = vmatprep.subr.bf16.mxu1 %v1798_v17 }
  0x40   :  { %1591 = vmatpush3.bf16.msra.mxu0 %v1588_v12 }
  0x41   :  { %1474 = vmatmul.mubr.msk.f32.vlgmr.msra.gmra.mrb[0].mxu1 %vm82_vm0, %v71_v15  ;;  %1600 = vmatprep.subr.bf16.mxu0 %v1798_v17 }
  0x42   :  { %1476 = vmatprep.mubr.msk.f32.mxu1 %vm82_vm0, %v72_v16  ;;  %1608 = vmatpush3.bf16.msra.mxu1 %v1918_v18 }
  0x43   :  { %1454 = vmatmul.mubr.msk.f32.vlgmr.msra.gmra.mrb[0].mxu0 %vm82_vm0, %v71_v15  ;;  %1609 = vmatprep.subr.bf16.mxu1 %v1798_v17 }
  0x44   :  { %1602 = vmatpush3.bf16.msra.mxu0 %v1918_v18  ;;  %1456 = vmatprep.mubr.msk.f32.mxu0 %vm82_vm0, %v72_v16 }
  0x45   :  { %1477 = vmatmul.mubr.msk.f32.gmra.mrb[2].mxu1 %vm82_vm0, %v73_v21  ;;  %1603 = vmatprep.subr.bf16.mxu0 %v1798_v17 }
  0x46   :  { %1479 = vmatprep.mubr.msk.f32.mxu1 %vm82_vm0, %v74_v22  ;;  %1611 = vmatpush3.bf16.msra.mxu1 %v1928_v23 }
  0x47   :  { %1457 = vmatmul.mubr.msk.f32.gmra.mrb[2].mxu0 %vm82_vm0, %v73_v21  ;;  %1618 = vmatprep.subr.bf16.mxu1 %v1798_v17 }
  0x48   :  { %1459 = vmatprep.mubr.msk.f32.mxu0 %vm82_vm0, %v74_v22  ;;  %1605 = vmatpush3.bf16.msra.mxu0 %v1928_v23 }
  0x49   :  { %1480 = vmatmul.mubr.msk.f32.gmra.mrb[4].mxu1 %vm82_vm0, %v75_v24  ;;  %1612 = vmatprep.subr.bf16.mxu0 %v1798_v17 }
  0x4a   :  { %1482 = vmatprep.mubr.msk.f32.mxu1 %vm82_vm0, %v76_v25 }
  0x4b   :  { %1460 = vmatmul.mubr.msk.f32.gmra.mrb[4].mxu0 %vm82_vm0, %v75_v24 }
  0x4c   :  { %1462 = vmatprep.mubr.msk.f32.mxu0 %vm82_vm0, %v76_v25 }
  0x4d   :  { %1483 = vmatmul.mubr.msk.f32.gmra.mrb[6].mxu1 %vm82_vm0, %v77_v26 }
  0x4e   :  { %1504 = vmatprep.mubr.msk.f32.mxu1 %vm1799_vm1, %v1800_v27 }
  0x4f   :  { %1463 = vmatmul.mubr.msk.f32.gmra.mrb[6].mxu0 %vm82_vm0, %v77_v26 }
  0x50   :  { %1493 = vmatprep.mubr.msk.f32.mxu0 %vm1799_vm1, %v1800_v27 }
  0x53   :  { %1494 = vmatmul.mubr.f32.vlgmr.msra.gmra.mrb[8].mxu0 %v1800_v27 }
  0x54   :  { %1614 = vmatpush3.bf16.msra.mxu0 %v1918_v18  ;;  %1515 = vmatprep.mubr.msk.f32.mxu0 %vm1799_vm1, %v1800_v27 }
  0x55   :  { %1615 = vmatprep.subr.bf16.mxu0 %v1798_v17 }
  0x58   :  { %1617 = vmatpush3.bf16.msra.mxu0 %v1928_v23 }
  0x59   :  { %1624 = vmatprep.subr.bf16.mxu0 %v1798_v17 }
 0x114   :  { %v1475_v31 = vpop.f32.mrb[0].mxu1 }
 0x115   :  { %v297_v32 = vpop.f32.mrb[1].mxu1  ;;  %v303_v41 = vadd.f32 %v1475_v31, %v1358_v35 }
 0x116   :  { %v1455_v36 = vpop.f32.mrb[0].mxu0  ;;  %v298_v45 = vadd.f32 %v1358_v35, %v297_v32 }
 0x117   :  { %213 = vst.msk [vmem:[%s2137_s8 + $0x8] sm:$0xff] %vm82_vm0, %v1455_v36  ;;  %v173_v39 = vpop.f32.mrb[1].mxu0 }
 0x118   :  { %v1478_v40 = vpop.f32.mrb[2].mxu1  ;;  %212 = vst.msk [vmem:[%s2137_s8] sm:$0xff] %vm82_vm0, %v173_v39 }
 0x119   :  { %v313_v42 = vadd.f32 %v1478_v40, %v1358_v35  ;;  %v307_v44 = vpop.f32.mrb[3].mxu1 }
 0x11a   :  { %v308_v46 = vadd.f32 %v1358_v35, %v307_v44  ;;  %v1458_v47 = vpop.f32.mrb[2].mxu0 }
 0x11b   :  { %v352_v49 = vcombine.low %v303_v41, %v313_v42  ;;  %v353_v50 = vcombine.high %v303_v41, %v313_v42  ;;  %215 = vst.msk [vmem:[%s2137_s8 + $0x18] sm:$0xff] %vm82_vm0, %v1458_v47  ;;  %v183_v51 = vpop.f32.mrb[3].mxu0 }
 0x11c   :  { %v336_v52 = vcombine.low %v298_v45, %v308_v46  ;;  %v337_v53 = vcombine.high %v298_v45, %v308_v46  ;;  %v1481_v54 = vpop.f32.mrb[4].mxu1  ;;  %214 = vst.msk [vmem:[%s2137_s8 + $0x10] sm:$0xff] %vm82_vm0, %v183_v51 }
 0x11d   :  { %v360_v55 = vrot.slane %v352_v49, %v343_v43  ;;  %v367_v56 = vrot.slane %v353_v50, %v343_v43  ;;  %v317_v57 = vpop.f32.mrb[5].mxu1  ;;  %v323_v4 = vadd.f32 %v1481_v54, %v1358_v35 }
 0x11e   :  { %v344_v58 = vrot.slane %v336_v52, %v343_v43  ;;  %v351_v59 = vrot.slane %v337_v53, %v343_v43  ;;  %v1461_v60 = vpop.f32.mrb[4].mxu0  ;;  %v318_v7 = vadd.f32 %v1358_v35, %v317_v57 }
 0x11f   :  { %217 = vst.msk [vmem:[%s2137_s8 + $0x28] sm:$0xff] %vm82_vm0, %v1461_v60  ;;  %v193_v62 = vpop.f32.mrb[5].mxu0 }
 0x120   :  { %v1484_v63 = vpop.f32.mrb[6].mxu1  ;;  %216 = vst.msk [vmem:[%s2137_s8 + $0x20] sm:$0xff] %vm82_vm0, %v193_v62  ;;  %v400_v0 = vcombine.low %v344_v58, %v360_v55  ;;  %v401_v1 = vcombine.high %v344_v58, %v360_v55  ;;  %v416_v2 = vcombine.low %v351_v59, %v367_v56  ;;  %v417_v3 = vcombine.high %v351_v59, %v367_v56 }
 0x121   :  { %v333_v5 = vadd.f32 %v1484_v63, %v1358_v35  ;;  %v327_v6 = vpop.f32.mrb[7].mxu1 }
 0x122   :  { %v328_v8 = vadd.f32 %v1358_v35, %v327_v6  ;;  %v1464_v9 = vpop.f32.mrb[6].mxu0  ;;  %v1983_v10 = vrot.slane %v401_v1, %v407_v61  ;;  %v1985_v11 = vrot.slane %v416_v2, %v407_v61  ;;  %v1991_v15 = vrot.slane %v417_v3, %v407_v61 }
 0x123   :  { %v384_v12 = vcombine.low %v323_v4, %v333_v5  ;;  %v385_v13 = vcombine.high %v323_v4, %v333_v5  ;;  %219 = vst.msk [vmem:[%s2137_s8 + $0x38] sm:$0xff] %vm82_vm0, %v1464_v9  ;;  %v203_v14 = vpop.f32.mrb[7].mxu0  ;;  %v408_v32 = vrot.slane %v400_v0, %v407_v61 }
 0x124   :  { %v368_v16 = vcombine.low %v318_v7, %v328_v8  ;;  %v369_v19 = vcombine.high %v318_v7, %v328_v8  ;;  %218 = vst.msk [vmem:[%s2137_s8 + $0x30] sm:$0xff] %vm82_vm0, %v203_v14  ;;  %s1803_s8 = smov 64  }
 0x125   :  { %v392_v20 = vrot.slane %v384_v12, %v343_v43  ;;  %v399_v21 = vrot.slane %v385_v13, %v343_v43 }
 0x126   :  { %v376_v22 = vrot.slane %v368_v16, %v343_v43  ;;  %v383_v24 = vrot.slane %v369_v19, %v343_v43  ;;  %v545_v25 = vpop.f32.mrb[8].mxu0 }
 0x127   :  { %v1495_v26 = vpop.f32.mrb[9].mxu0 }
 0x128   :  { %v432_v28 = vcombine.low %v376_v22, %v392_v20  ;;  %v433_v29 = vcombine.high %v376_v22, %v392_v20  ;;  %v448_v30 = vcombine.low %v383_v24, %v399_v21  ;;  %v449_v31 = vcombine.high %v383_v24, %v399_v21 }
 0x12a   :  { %v440_v33 = vrot.slane %v432_v28, %v407_v61  ;;  %v1997_v34 = vrot.slane %v433_v29, %v407_v61  ;;  %v1999_v35 = vrot.slane %v448_v30, %v407_v61  ;;  %v2001_v36 = vrot.slane %v449_v31, %v407_v61 }
 0x12c   :  { %v464_v37 = vcombine.low %v408_v32, %v440_v33  ;;  %v465_v38 = vcombine.high %v408_v32, %v440_v33  ;;  %v466_v39 = vcombine.low %v1983_v10, %v1997_v34  ;;  %v467_v40 = vcombine.high %v1983_v10, %v1997_v34 }
 0x12d   :  { %v468_v41 = vcombine.low %v1985_v11, %v1999_v35  ;;  %v469_v42 = vcombine.high %v1985_v11, %v1999_v35  ;;  %v470_v43 = vcombine.low %v1991_v15, %v2001_v36  ;;  %v471_v44 = vcombine.high %v1991_v15, %v2001_v36  ;;  %v1242_v15 = vld [vmem:[%s2134_s5] sm:$0xff]  ;;  %v1243_v36 = vld [vmem:[%s2134_s5 + $0x8] sm:$0xff] }
 0x12e   :  { %v549_v45 = vadd.f32 %v545_v25, %v464_v37 }
 0x130   :  { %1667 = vtanh.f32 %v549_v45 }
 0x13a   :  { %v1668_v46 = vpop.eup %1667 }
 0x13b   :  { %555 = vrot.lane.b32.xlu0 %v1668_v46, %s1803_s8  ;;  %v551_v47 = vmul.f32 0.5, %v1668_v46 }
 0x13d   :  { %v552_v48 = vadd.f32 0.5, %v551_v47 }
 0x13f   :  { %v553_v51 = vmul.f32 0.0, %v552_v48 }
 0x1ad   :  { %v556_v49 = vpop.permute.xlu0 %555 }
 0x1ae   :  { %v558_v50 = vmul.f32 %v556_v49, %v552_v48 }
 0x1b0   :  { %560 = vrot.lane.b32.xlu0 %v558_v50, %s1804_s30 }
 0x222   :  { %v561_v52 = vpop.permute.xlu0 %560 }
 0x223   :  { %v563_v53 = vadd.f32 %v561_v52, %v553_v51 }
 0x225   :  { %1669 = vtanh.f32 %v563_v53 }
 0x22f   :  { %v1670_v54 = vpop.eup %1669 }
 0x230   :  { %566 = vrot.lane.b32.xlu1 %v1670_v54, %s1803_s8 }
 0x2a2   :  { %v567_v55 = vpop.permute.xlu1 %566 }
 0x2a3   :  { %v569_v56 = vmul.f32 %v567_v55, %v552_v48 }
 0x2a5   :  { %571 = vrot.lane.b32.xlu1 %v569_v56, %s1804_s30 }
 0x317   :  { %v572_v57 = vpop.permute.xlu1 %571 }
 0x318   :  { %1505 = vmatmul.mubr.msk.f32.vlgmr.msra.gmra.mrb[8].mxu1 %vm82_vm0, %v572_v57 }
 0x319   :  { %1620 = vmatpush3.bf16.msra.mxu1 %v1918_v18  ;;  %1526 = vmatprep.mubr.msk.f32.mxu1 %vm1799_vm1, %v1800_v27 }
 0x31a   :  { %1621 = vmatprep.subr.bf16.mxu1 %v1798_v17 }
 0x31d   :  { %1623 = vmatpush3.bf16.msra.mxu1 %v1928_v23 }
 0x31e   :  { %1630 = vmatprep.subr.bf16.mxu1 %v1798_v17 }
 0x3eb   :  { %v641_v58 = vpop.f32.mrb[8].mxu1 }
 0x3ec   :  { %v645_v59 = vadd.f32 %v641_v58, %v465_v38  ;;  %v1506_v60 = vpop.f32.mrb[9].mxu1 }
 0x3ee   :  { %1671 = vtanh.f32 %v645_v59 }
 0x3f8   :  { %v1672_v61 = vpop.eup %1671 }
 0x3f9   :  { %651 = vrot.lane.b32.xlu0 %v1672_v61, %s1803_s8  ;;  %v647_v62 = vmul.f32 0.5, %v1672_v61 }
 0x3fb   :  { %v648_v63 = vadd.f32 0.5, %v647_v62 }
 0x3fd   :  { %v649_v2 = vmul.f32 %v648_v63, %v563_v53 }
 0x46b   :  { %v652_v0 = vpop.permute.xlu0 %651 }
 0x46c   :  { %v654_v1 = vmul.f32 %v652_v0, %v648_v63 }
 0x46e   :  { %656 = vrot.lane.b32.xlu1 %v654_v1, %s1804_s30 }
 0x4e0   :  { %v657_v3 = vpop.permute.xlu1 %656 }
 0x4e1   :  { %v659_v4 = vadd.f32 %v657_v3, %v649_v2 }
 0x4e3   :  { %1673 = vtanh.f32 %v659_v4 }
 0x4ed   :  { %v1674_v5 = vpop.eup %1673 }
 0x4ee   :  { %662 = vrot.lane.b32.xlu0 %v1674_v5, %s1803_s8 }
 0x560   :  { %v663_v6 = vpop.permute.xlu0 %662 }
 0x561   :  { %v665_v7 = vmul.f32 %v663_v6, %v648_v63 }
 0x563   :  { %667 = vrot.lane.b32.xlu1 %v665_v7, %s1804_s30 }
 0x5d5   :  { %v668_v8 = vpop.permute.xlu1 %667 }
 0x5d6   :  { %1516 = vmatmul.mubr.msk.f32.vlgmr.msra.gmra.mrb[10].mxu0 %vm82_vm0, %v668_v8 }
 0x5d7   :  { %1626 = vmatpush3.bf16.msra.mxu0 %v1918_v18  ;;  %1537 = vmatprep.mubr.msk.f32.mxu0 %vm1799_vm1, %v1800_v27 }
 0x5d8   :  { %1627 = vmatprep.subr.bf16.mxu0 %v1798_v17 }
 0x5db   :  { %1629 = vmatpush3.bf16.msra.mxu0 %v1928_v23 }
 0x5dc   :  { %1636 = vmatprep.subr.bf16.mxu0 %v1798_v17 }
 0x6a9   :  { %v737_v9 = vpop.f32.mrb[10].mxu0 }
 0x6aa   :  { %v741_v12 = vadd.f32 %v737_v9, %v466_v39  ;;  %v1517_v13 = vpop.f32.mrb[11].mxu0 }
 0x6ac   :  { %1675 = vtanh.f32 %v741_v12 }
 0x6b6   :  { %v1676_v14 = vpop.eup %1675 }
 0x6b7   :  { %747 = vrot.lane.b32.xlu0 %v1676_v14, %s1803_s8  ;;  %v743_v16 = vmul.f32 0.5, %v1676_v14 }
 0x6b9   :  { %v744_v19 = vadd.f32 0.5, %v743_v16 }
 0x6bb   :  { %v745_v22 = vmul.f32 %v744_v19, %v659_v4 }
 0x729   :  { %v748_v20 = vpop.permute.xlu0 %747 }
 0x72a   :  { %v750_v21 = vmul.f32 %v748_v20, %v744_v19 }
 0x72c   :  { %752 = vrot.lane.b32.xlu1 %v750_v21, %s1804_s30 }
 0x79e   :  { %v753_v24 = vpop.permute.xlu1 %752 }
 0x79f   :  { %v755_v25 = vadd.f32 %v753_v24, %v745_v22 }
 0x7a1   :  { %1677 = vtanh.f32 %v755_v25 }
 0x7ab   :  { %v1678_v26 = vpop.eup %1677 }
 0x7ac   :  { %758 = vrot.lane.b32.xlu0 %v1678_v26, %s1803_s8 }
 0x81e   :  { %v759_v28 = vpop.permute.xlu0 %758 }
 0x81f   :  { %v761_v29 = vmul.f32 %v759_v28, %v744_v19 }
 0x821   :  { %763 = vrot.lane.b32.xlu1 %v761_v29, %s1804_s30 }
 0x893   :  { %v764_v30 = vpop.permute.xlu1 %763 }
 0x894   :  { %1527 = vmatmul.mubr.msk.f32.vlgmr.msra.gmra.mrb[10].mxu1 %vm82_vm0, %v764_v30 }
 0x895   :  { %1632 = vmatpush3.bf16.msra.mxu1 %v1918_v18  ;;  %1548 = vmatprep.mubr.msk.f32.mxu1 %vm1799_vm1, %v1800_v27 }
 0x896   :  { %1633 = vmatprep.subr.bf16.mxu1 %v1798_v17 }
 0x899   :  { %1635 = vmatpush3.bf16.msra.mxu1 %v1928_v23 }
 0x89a   :  { %1642 = vmatprep.subr.bf16.mxu1 %v1798_v17 }
 0x967   :  { %v833_v31 = vpop.f32.mrb[10].mxu1 }
 0x968   :  { %v837_v32 = vadd.f32 %v833_v31, %v467_v40  ;;  %v1528_v33 = vpop.f32.mrb[11].mxu1 }
 0x96a   :  { %1679 = vtanh.f32 %v837_v32 }
 0x974   :  { %v1680_v37 = vpop.eup %1679 }
 0x975   :  { %843 = vrot.lane.b32.xlu0 %v1680_v37, %s1803_s8  ;;  %v839_v38 = vmul.f32 0.5, %v1680_v37 }
 0x977   :  { %v840_v39 = vadd.f32 0.5, %v839_v38 }
 0x979   :  { %v841_v47 = vmul.f32 %v840_v39, %v755_v25 }
 0x9e7   :  { %v844_v45 = vpop.permute.xlu0 %843 }
 0x9e8   :  { %v846_v46 = vmul.f32 %v844_v45, %v840_v39 }
 0x9ea   :  { %848 = vrot.lane.b32.xlu1 %v846_v46, %s1804_s30 }
 0xa5c   :  { %v849_v48 = vpop.permute.xlu1 %848 }
 0xa5d   :  { %v851_v49 = vadd.f32 %v849_v48, %v841_v47 }
 0xa5f   :  { %1681 = vtanh.f32 %v851_v49 }
 0xa69   :  { %v1682_v50 = vpop.eup %1681 }
 0xa6a   :  { %854 = vrot.lane.b32.xlu0 %v1682_v50, %s1803_s8  ;;  %v1649_v50 = vpack.c.bf16 %v1243_v36, %v1242_v15 }
 0xadc   :  { %v855_v10 = vpop.permute.xlu0 %854 }
 0xadd   :  { %v857_v34 = vmul.f32 %v855_v10, %v840_v39  ;;  %v1245_v10 = vld [vmem:[%s2134_s5 + $0x18] sm:$0xff] }
 0xadf   :  { %859 = vrot.lane.b32.xlu1 %v857_v34, %s1804_s30 }
 0xb51   :  { %v860_v40 = vpop.permute.xlu1 %859 }
 0xb52   :  { %1538 = vmatmul.mubr.msk.f32.vlgmr.msra.gmra.mrb[12].mxu0 %vm82_vm0, %v860_v40 }
 0xb53   :  { %1638 = vmatpush3.bf16.msra.mxu0 %v1918_v18  ;;  %1559 = vmatprep.mubr.msk.f32.mxu0 %vm1799_vm1, %v1800_v27 }
 0xb54   :  { %1639 = vmatprep.subr.bf16.mxu0 %v1798_v17 }
 0xb57   :  { %1641 = vmatpush3.bf16.msra.mxu0 %v1928_v23 }
 0xb58   :  { %1648 = vmatprep.subr.bf16.mxu0 %v1798_v17 }
 0xc25   :  { %v929_v51 = vpop.f32.mrb[12].mxu0 }
 0xc26   :  { %v933_v52 = vadd.f32 %v929_v51, %v468_v41  ;;  %v1539_v53 = vpop.f32.mrb[13].mxu0 }
 0xc28   :  { %1683 = vtanh.f32 %v933_v52 }
 0xc32   :  { %v1684_v54 = vpop.eup %1683 }
 0xc33   :  { %939 = vrot.lane.b32.xlu0 %v1684_v54, %s1803_s8  ;;  %v935_v55 = vmul.f32 0.5, %v1684_v54  ;;  %v1374_v54 = vld [vmem:[%s2135_s6] ss:$0 sm:$0xff] }
 0xc35   :  { %v936_v56 = vadd.f32 0.5, %v935_v55 }
 0xc37   :  { %v937_v59 = vmul.f32 %v936_v56, %v851_v49 }
 0xca5   :  { %v940_v57 = vpop.permute.xlu0 %939 }
 0xca6   :  { %v942_v58 = vmul.f32 %v940_v57, %v936_v56 }
 0xca8   :  { %944 = vrot.lane.b32.xlu1 %v942_v58, %s1804_s30 }
 0xd1a   :  { %v945_v60 = vpop.permute.xlu1 %944 }
 0xd1b   :  { %v947_v61 = vadd.f32 %v945_v60, %v937_v59 }
 0xd1d   :  { %1685 = vtanh.f32 %v947_v61 }
 0xd27   :  { %v1686_v62 = vpop.eup %1685 }
 0xd28   :  { %950 = vrot.lane.b32.xlu0 %v1686_v62, %s1803_s8 }
 0xd9a   :  { %v951_v63 = vpop.permute.xlu0 %950 }
 0xd9b   :  { %v953_v41 = vmul.f32 %v951_v63, %v936_v56 }
 0xd9d   :  { %955 = vrot.lane.b32.xlu1 %v953_v41, %s1804_s30 }
 0xe0f   :  { %v956_v0 = vpop.permute.xlu1 %955 }
 0xe10   :  { %1549 = vmatmul.mubr.msk.f32.vlgmr.msra.gmra.mrb[12].mxu1 %vm82_vm0, %v956_v0 }
 0xe11   :  { %1644 = vmatpush3.bf16.msra.mxu1 %v1918_v18  ;;  %1570 = vmatprep.mubr.msk.f32.mxu1 %vm1799_vm1, %v1800_v27 }
 0xe12   :  { %1645 = vmatprep.subr.bf16.mxu1 %v1798_v17 }
 0xe15   :  { %1647 = vmatpush3.bf16.msra.mxu1 %v1928_v23 }
 0xee3   :  { %v1025_v1 = vpop.f32.mrb[12].mxu1 }
 0xee4   :  { %v1029_v2 = vadd.f32 %v1025_v1, %v469_v42  ;;  %v1550_v3 = vpop.f32.mrb[13].mxu1 }
 0xee6   :  { %1687 = vtanh.f32 %v1029_v2 }
 0xef0   :  { %v1688_v4 = vpop.eup %1687 }
 0xef1   :  { %1035 = vrot.lane.b32.xlu0 %v1688_v4, %s1803_s8  ;;  %v1031_v5 = vmul.f32 0.5, %v1688_v4 }
 0xef3   :  { %v1032_v6 = vadd.f32 0.5, %v1031_v5 }
 0xef5   :  { %v1033_v8 = vmul.f32 %v1032_v6, %v947_v61 }
 0xf63   :  { %v1036_v18 = vpop.permute.xlu0 %1035 }
 0xf64   :  { %v1038_v7 = vmul.f32 %v1036_v18, %v1032_v6 }
 0xf66   :  { %1040 = vrot.lane.b32.xlu1 %v1038_v7, %s1804_s30 }
 0xfd8   :  { %v1041_v9 = vpop.permute.xlu1 %1040 }
 0xfd9   :  { %v1043_v12 = vadd.f32 %v1041_v9, %v1033_v8 }
 0xfdb   :  { %1689 = vtanh.f32 %v1043_v12 }
 0xfe5   :  { %v1690_v23 = vpop.eup %1689 }
 0xfe6   :  { %1046 = vrot.lane.b32.xlu0 %v1690_v23, %s1803_s8 }
0x1058   :  { %v1047_v11 = vpop.permute.xlu0 %1046 }
0x1059   :  { %v1049_v35 = vmul.f32 %v1047_v11, %v1032_v6 }
0x105b   :  { %1051 = vrot.lane.b32.xlu1 %v1049_v35, %s1804_s30 }
0x10cd   :  { %v1052_v42 = vpop.permute.xlu1 %1051 }
0x10ce   :  { %1560 = vmatmul.mubr.msk.f32.vlgmr.msra.gmra.mrb[14].mxu0 %vm82_vm0, %v1052_v42 }
0x10cf   :  { %1581 = vmatprep.mubr.msk.f32.mxu0 %vm1799_vm1, %v1800_v27  ;;  %1650 = vmatpush3.bf16.msra.mxu0 %v1649_v50 }
0x10d0   :  { %1651 = vmatprep.subr.bf16.mxu0 %v1798_v17 }
0x11a1   :  { %v1121_v13 = vpop.f32.mrb[14].mxu0 }
0x11a2   :  { %v1125_v14 = vadd.f32 %v1121_v13, %v470_v43  ;;  %v1561_v16 = vpop.f32.mrb[15].mxu0 }
0x11a4   :  { %1691 = vtanh.f32 %v1125_v14 }
0x11ae   :  { %v1692_v19 = vpop.eup %1691 }
0x11af   :  { %1131 = vrot.lane.b32.xlu0 %v1692_v19, %s1803_s8  ;;  %v1127_v20 = vmul.f32 0.5, %v1692_v19 }
0x11b1   :  { %v1128_v21 = vadd.f32 0.5, %v1127_v20 }
0x11b3   :  { %v1129_v25 = vmul.f32 %v1128_v21, %v1043_v12 }
0x1221   :  { %v1132_v22 = vpop.permute.xlu0 %1131 }
0x1222   :  { %v1134_v24 = vmul.f32 %v1132_v22, %v1128_v21 }
0x1224   :  { %1136 = vrot.lane.b32.xlu1 %v1134_v24, %s1804_s30 }
0x1296   :  { %v1137_v26 = vpop.permute.xlu1 %1136 }
0x1297   :  { %v1139_v28 = vadd.f32 %v1137_v26, %v1129_v25 }
0x1299   :  { %1693 = vtanh.f32 %v1139_v28 }
0x12a3   :  { %v1694_v27 = vpop.eup %1693 }
0x12a4   :  { %1142 = vrot.lane.b32.xlu0 %v1694_v27, %s1803_s8 }
0x1316   :  { %v1143_v29 = vpop.permute.xlu0 %1142 }
0x1317   :  { %v1145_v43 = vmul.f32 %v1143_v29, %v1128_v21 }
0x1319   :  { %1147 = vrot.lane.b32.xlu1 %v1145_v43, %s1804_s30 }
0x138b   :  { %v1148_v30 = vpop.permute.xlu1 %1147 }
0x138c   :  { %1571 = vmatmul.mubr.msk.f32.vlgmr.msra.gmra.mrb[14].mxu1 %vm82_vm0, %v1148_v30 }
0x145f   :  { %v1217_v31 = vpop.f32.mrb[14].mxu1 }
0x1460   :  { %v1221_v32 = vadd.f32 %v1217_v31, %v471_v44  ;;  %v1572_v33 = vpop.f32.mrb[15].mxu1  ;;  %v1244_v44 = vld [vmem:[%s2134_s5 + $0x10] sm:$0xff]  ;;  %s1805_s5 = smov [#allocation8]  }
0x1461   :  { %v1652_v34 = vpack.c.bf16 %v1245_v10, %v1244_v44  ;;  %s1336_s27 = sshll.u32 %s1805_s5, 4  ;;  %s1337_s27 = int_to_ptr.vmem [resolvable:$true] %s1336_s27 }
0x1462   :  { %1695 = vtanh.f32 %v1221_v32  ;;  %s1765_s29 = scalar_lea.vmem %s1337_s27, 128  ;;  %p1770_p11 = scmp.lt.s32.totalorder %s1337_s27, %s1337_s27 }
0x1463   :  { %1653 = vmatpush3.bf16.msra.mxu0 %v1652_v34  ;;  %p1766_p10 = scmp.ne.s32.totalorder %s1337_s27, %s1765_s29  ;;  %p1771_p12 = scmp.lt.s32.totalorder %s1765_s29, %s1765_s29 }
0x1465   :  { %p1772_p13 = por %p1771_p12, %p1770_p11 }
0x1467   :  { %p1773_p0 = pnand %p1772_p13, %p1766_p10 }
0x146c   :  { %v1696_v37 = vpop.eup %1695 }
0x146d   :  { %1227 = vrot.lane.b32.xlu0 %v1696_v37, %s1803_s8  ;;  %v1223_v38 = vmul.f32 0.5, %v1696_v37 }
0x146f   :  { %v1224_v39 = vadd.f32 0.5, %v1223_v38 }
0x1471   :  { %v1225_v47 = vmul.f32 %v1224_v39, %v1139_v28 }
0x14df   :  { %v1228_v45 = vpop.permute.xlu0 %1227 }
0x14e0   :  { %v1230_v46 = vmul.f32 %v1228_v45, %v1224_v39 }
0x14e2   :  { %1232 = vrot.lane.b32.xlu1 %v1230_v46, %s1804_s30 }
0x1554   :  { %v1233_v48 = vpop.permute.xlu1 %1232 }
0x1555   :  { %v1235_v49 = vadd.f32 %v1233_v48, %v1225_v47 }
0x1557   :  { %1697 = vtanh.f32 %v1235_v49 }
0x1561   :  { %v1698_v40 = vpop.eup %1697 }
0x1562   :  { %1238 = vrot.lane.b32.xlu0 %v1698_v40, %s1803_s8 }
0x15d4   :  { %v1239_v51 = vpop.permute.xlu0 %1238 }
0x15d5   :  { %v1241_v52 = vmul.f32 %v1239_v51, %v1224_v39 }
0x15d7   :  { %1254 = vrot.lane.b32.xlu1 %v1241_v52, %s1804_s30 }
0x1649   :  { %v1255_v53 = vpop.permute.xlu1 %1254 }
0x164a   :  { %1582 = vmatmul.mubr.msk.f32.vlgmr.msra.gmra.mrb[16].mxu0 %vm82_vm0, %v1255_v53 }
0x171d   :  { %v1324_v55 = vpop.f32.mrb[16].mxu0 }
0x171e   :  { %v1325_v17 = vadd.f32 %v1374_v54, %v1324_v55  ;;  %v1583_v56 = vpop.f32.mrb[17].mxu0 }
0x1720   :  { %1329 = vst.msk [vmem:[#allocation8] sm:$0xff] %vm1328_vm2, %v1325_v17 }
0x1721   :  { %1776 = shalt.err (!%p1773_p0)
}
0x1722   :  { %s1777_s4 = scalar_lea.hbm %s2136_s7, 128 }
0x1723   :  { %p1778_p1 = scmp.ne.s32.totalorder %s2136_s7, %s1777_s4  ;;  %p1781_p2 = scmp.lt.u32.totalorder %s1777_s4, %s2136_s7 }
0x1725   :  { %p1783_p3 = pnand %p1781_p2, %p1778_p1 }
0x1727   :  { %1786 = shalt.err (!%p1783_p3)
}
0x1728   :  { %1339 = dma.vmem_to_hbm [thread:$0]  %s1337_s27, 128, %s2136_s7, [#allocation4]  }
0x1729   :  { %1791 = dma.done.wait [#allocation4], 128  }
0x172a   :  { %1792 = vsyncadd [#allocation4], 4294967168 }
0x172b   :  { %1347 = vsyncpa [#allocation3], 1 }
0x172c   :  { %1348 = vsyncpa [#allocation6], 1 }
0x172d   :  { %1349 = vsyncpa [#allocation4], 1 }

</bundles_post_ra>
